<compile_context>
chip_gen: v7x
topology: tpu7x:2x2x1
jax: 0.10.0
libtpu: 0.0.40
codegen_flags: <defaults>
</compile_context>

<pallas_src>
import numpy as np
import jax
import jax.numpy as jnp
from jax.experimental import pallas as pl
from jax.experimental.pallas import tpu as pltpu


def transition_kernel(x_ref, scale_ref, shift_ref, w_ref, pool_ref, o_ref):
    # x_ref    : (1, Cin, Pc, 2W)  Pc row-pairs; a pair's two rows are concatenated on lanes
    # scale_ref: (Cin, 1)          folded BN scale  gamma / sqrt(var + eps)
    # shift_ref: (Cin, 1)          folded BN shift  beta - mean * scale
    # w_ref    : (Cout, Cin)       1x1 conv weight
    # pool_ref : (2W, Wo)          2x2 avg-pool matrix (0 / 0.25): one matmul over the
    #                              paired-row lane axis performs BOTH pool dimensions
    # o_ref    : (1, Cout, Pc*Wo)  lane-dense output block, row-major (pair, Wo)
    _, cin, pc, two_w = x_ref.shape
    wo = pool_ref.shape[1]

    # Grid-invariant operands: load once, hoist broadcasts out of the pair loop.
    scale = jnp.broadcast_to(scale_ref[...], (cin, two_w))
    shift = jnp.broadcast_to(shift_ref[...], (cin, two_w))
    w = w_ref[...]
    pool = pool_ref[...]

    # Static (unrolled) loop over row pairs: every op is 2-D (elementwise or jnp.dot),
    # with only static ref indexing -> no cross-lane/sublane reshapes to lower.
    for p in range(pc):
        xp = x_ref[0, :, p, :]                                            # (Cin, 2W)
        yp = jnp.maximum(xp * scale + shift, 0.0)                         # BN + ReLU
        # 2x2 avg pool, commuted before the 1x1 conv (exact, by linearity):
        pooled = jnp.dot(yp, pool, preferred_element_type=jnp.float32)    # (Cin, Wo)
        outp = jnp.dot(w, pooled, preferred_element_type=jnp.float32)     # (Cout, Wo)
        o_ref[0, :, p * wo:(p + 1) * wo] = outp.astype(o_ref.dtype)


def _choose_pair_chunk(ho, wo):
    """Chunk the row-pair axis only when it obeys the TPU tiling rules:
       Pc | Ho, Pc % 8 == 0 (sublane tile) and (Pc*Wo) % 128 == 0 (lane-dense out
       block). Otherwise fall back to whole-image blocks (Pc == Ho)."""
    legal = [pc for pc in range(8, ho, 8)
             if ho % pc == 0 and (pc * wo) % 128 == 0]
    if not legal:
        return ho
    preferred = [pc for pc in legal if ho // pc >= 4]   # a few steps per core
    return max(preferred) if preferred else max(legal)


def _vmem_limit_bytes(cin, cout, pc, w, wo):
    f32 = 4
    in_blk = cin * pc * 2 * w * f32
    out_blk = cout * pc * wo * f32
    invariant = (2 * cin + cout * cin + 2 * w * wo) * f32
    need = 2 * (in_blk + out_blk + invariant)            # double-buffered worst case
    return int(min(max(2 * need + (4 << 20), 8 << 20), 100 << 20))


@jax.jit
def transition_forward(x_nchw, gamma, beta, conv_w, eps=1e-5):
    n, cin, h, w = x_nchw.shape
    cout = conv_w.shape[0]
    assert h % 2 == 0 and w % 2 == 0, "avg_pool2d(2) truncation for odd H/W not supported"
    ho, wo = h // 2, w // 2

    # ---- BatchNorm2d (training mode) batch statistics in ONE pass over x ----------
    # var = E[x^2] - mean^2 (single fused reduction under jit; clamped for safety).
    x_flat = x_nchw.reshape(n, cin, h * w)
    cnt = n * h * w
    s1 = jnp.sum(x_flat, axis=(0, 2))
    s2 = jnp.sum(x_flat * x_flat, axis=(0, 2))
    mean = s1 / cnt
    var = jnp.maximum(s2 / cnt - mean * mean, 0.0)
    scale = gamma * jax.lax.rsqrt(var + eps)             # (Cin,)
    shift = beta - mean * scale                          # (Cin,)

    w2d = conv_w[:, :, 0, 0]                             # (Cout, Cin)

    # ---- Factored 2x2 average pool -------------------------------------------------
    # Free reshape: (N, Cin, H, W) -> (N, Cin, H/2, 2W) concatenates each row pair on
    # the lane axis, so a single constant (2W, Wo) matrix does the whole 2x2 pool.
    # Built in numpy -> compile-time constant, never rebuilt/written per call.
    j = np.arange(2 * w)
    pool_np = np.zeros((2 * w, wo), np.float32)
    pool_np[j, (j % w) // 2] = 0.25
    pool_m = jnp.asarray(pool_np)

    pc = _choose_pair_chunk(ho, wo)
    nc = ho // pc
    x4 = x_nchw.reshape(n, cin, ho, 2 * w)               # free reshape (contiguous)

    out_flat = pl.pallas_call(
        transition_kernel,
        out_shape=jax.ShapeDtypeStruct((n, cout, ho * wo), jnp.float32),
        grid_spec=pltpu.PrefetchScalarGridSpec(
            num_scalar_prefetch=0,
            grid=(n, nc),
            in_specs=[
                pl.BlockSpec((1, cin, pc, 2 * w), lambda i, c: (i, 0, c, 0)),
                # Grid-invariant operands (tiny after the pool factorization).
                pl.BlockSpec((cin, 1), lambda i, c: (0, 0)),
                pl.BlockSpec((cin, 1), lambda i, c: (0, 0)),
                pl.BlockSpec((cout, cin), lambda i, c: (0, 0)),
                pl.BlockSpec((2 * w, wo), lambda i, c: (0, 0)),
            ],
            out_specs=pl.BlockSpec((1, cout, pc * wo), lambda i, c: (i, 0, c)),
        ),
        compiler_params=pltpu.CompilerParams(
            dimension_semantics=("parallel", "parallel"),
            vmem_limit_bytes=_vmem_limit_bytes(cin, cout, pc, w, wo),
        ),
    )(x4, scale.reshape(cin, 1), shift.reshape(cin, 1), w2d, pool_m)

    # Free reshape back to NCHW: (N, Cout, Ho, Wo).
    return out_flat.reshape(n, cout, ho, wo)


def transition_ref(x, gamma, beta, conv_w, eps=1e-5):
    # Pure-JAX reference mirroring the PyTorch forward (training-mode BN).
    mean = jnp.mean(x, axis=(0, 2, 3), keepdims=True)
    var = jnp.mean((x - mean) ** 2, axis=(0, 2, 3), keepdims=True)
    y = (x - mean) / jnp.sqrt(var + eps) * gamma[None, :, None, None] \
        + beta[None, :, None, None]
    y = jnp.maximum(y, 0.0)
    z = jnp.einsum('oi,nihw->nohw', conv_w[:, :, 0, 0], y)
    nb, co, hh, ww = z.shape
    return z.reshape(nb, co, hh // 2, 2, ww // 2, 2).mean(axis=(3, 5))


if __name__ == "__main__":
    key = jax.random.PRNGKey(0)
    k1, k2, k3, k4 = jax.random.split(key, 4)

    N, Cin, H, W = 2, 4, 16, 16      # small NCHW input
    Cout = 8                         # Transition(inplanes=4, outplanes=8)

    x = jax.random.normal(k1, (N, Cin, H, W), jnp.float32)
    # Deterministic synthetic parameters (shapes per nn.BatchNorm2d / nn.Conv2d).
    gamma = 1.0 + 0.1 * jax.random.normal(k2, (Cin,), jnp.float32)
    beta = 0.1 * jax.random.normal(k3, (Cin,), jnp.float32)
    conv_w = jax.random.normal(k4, (Cout, Cin, 1, 1), jnp.float32) / jnp.sqrt(Cin)

    out = jax.block_until_ready(transition_forward(x, gamma, beta, conv_w))
    ref = transition_ref(x, gamma, beta, conv_w)

    assert out.shape == (N, Cout, H // 2, W // 2), out.shape
    assert jnp.allclose(out, ref, rtol=1e-4, atol=1e-4), \
        float(jnp.max(jnp.abs(out - ref)))
    print("KERNEL_OK")
</pallas_src>

<mosaic_0001>
module attributes {stable_mosaic.version = 11 : i64} {
  func.func @transition_kernel(%arg0: i32, %arg1: i32, %arg2: memref<1x4x8x32xf32, #tpu.memory_space<vmem>>, %arg3: memref<4x1xf32, #tpu.memory_space<vmem>>, %arg4: memref<4x1xf32, #tpu.memory_space<vmem>>, %arg5: memref<8x4xf32, #tpu.memory_space<vmem>>, %arg6: memref<32x8xf32, #tpu.memory_space<vmem>>, %arg7: memref<1x8x64xf32, #tpu.memory_space<vmem>>) attributes {dimension_semantics = [#tpu.dimension_semantics<parallel>, #tpu.dimension_semantics<parallel>], iteration_bounds = array<i64: 2, 1>, scalar_prefetch = 0 : i64, scratch_operands = 0 : i64, tpu.core_type = #tpu.core_type<tc>, window_params = [{transform_indices = @transform_0, window_bounds = array<i64: 1, 4, 8, 32>}, {pipeline_mode = #tpu.pipeline_mode<synchronous>, transform_indices = @transform_1, window_bounds = array<i64: 4, 1>}, {pipeline_mode = #tpu.pipeline_mode<synchronous>, transform_indices = @transform_2, window_bounds = array<i64: 4, 1>}, {pipeline_mode = #tpu.pipeline_mode<synchronous>, transform_indices = @transform_3, window_bounds = array<i64: 8, 4>}, {pipeline_mode = #tpu.pipeline_mode<synchronous>, transform_indices = @transform_4, window_bounds = array<i64: 32, 8>}, {transform_indices = @transform_5, window_bounds = array<i64: 1, 8, 64>}]} {
    %c0 = arith.constant 0 : index
    %c0_0 = arith.constant 0 : index
    %0 = vector.load %arg3[%c0, %c0_0] : memref<4x1xf32, #tpu.memory_space<vmem>>, vector<4x1xf32>
    %1 = vector.shape_cast %0 : vector<4x1xf32> to vector<4x1xf32>
    %2 = vector.broadcast %1 : vector<4x1xf32> to vector<4x32xf32>
    %c0_1 = arith.constant 0 : index
    %c0_2 = arith.constant 0 : index
    %3 = vector.load %arg4[%c0_1, %c0_2] : memref<4x1xf32, #tpu.memory_space<vmem>>, vector<4x1xf32>
    %4 = vector.shape_cast %3 : vector<4x1xf32> to vector<4x1xf32>
    %5 = vector.broadcast %4 : vector<4x1xf32> to vector<4x32xf32>
    %c0_3 = arith.constant 0 : index
    %c0_4 = arith.constant 0 : index
    %6 = vector.load %arg5[%c0_3, %c0_4] : memref<8x4xf32, #tpu.memory_space<vmem>>, vector<8x4xf32>
    %c0_5 = arith.constant 0 : index
    %c0_6 = arith.constant 0 : index
    %7 = vector.load %arg6[%c0_5, %c0_6] : memref<32x8xf32, #tpu.memory_space<vmem>>, vector<32x8xf32>
    %c0_7 = arith.constant 0 : index
    %c0_8 = arith.constant 0 : index
    %c0_9 = arith.constant 0 : index
    %c0_10 = arith.constant 0 : index
    %8 = vector.load %arg2[%c0_7, %c0_8, %c0_9, %c0_10] : memref<1x4x8x32xf32, #tpu.memory_space<vmem>>, vector<1x4x1x32xf32>
    %9 = vector.shape_cast %8 : vector<1x4x1x32xf32> to vector<4x32xf32>
    %10 = arith.mulf %9, %2 : vector<4x32xf32>
    %11 = arith.addf %10, %5 : vector<4x32xf32>
    %cst = arith.constant 0.000000e+00 : f32
    %12 = vector.broadcast %cst : f32 to vector<4x32xf32>
    %13 = arith.maximumf %11, %12 : vector<4x32xf32>
    %cst_11 = arith.constant dense<0.000000e+00> : vector<4x8xf32>
    %14 = tpu.matmul %13, %7, %cst_11 {dimension_numbers = #tpu.dot_dimension_numbers<[1], [0], [0], [1], [0, 0, 1, 1], [], []>} : vector<4x32xf32>, vector<32x8xf32>, vector<4x8xf32> -> vector<4x8xf32>
    %cst_12 = arith.constant dense<0.000000e+00> : vector<8x8xf32>
    %15 = tpu.matmul %6, %14, %cst_12 {dimension_numbers = #tpu.dot_dimension_numbers<[1], [0], [0], [1], [0, 0, 1, 1], [], []>} : vector<8x4xf32>, vector<4x8xf32>, vector<8x8xf32> -> vector<8x8xf32>
    %c0_13 = arith.constant 0 : index
    %c0_14 = arith.constant 0 : index
    %c0_15 = arith.constant 0 : index
    %16 = vector.load %arg7[%c0_13, %c0_14, %c0_15] : memref<1x8x64xf32, #tpu.memory_space<vmem>>, vector<1x8x8xf32>
    %17 = vector.shape_cast %16 : vector<1x8x8xf32> to vector<8x8xf32>
    %18 = vector.shape_cast %15 : vector<8x8xf32> to vector<1x8x8xf32>
    tpu.vector_store %arg7[%c0_13, %c0_14, %c0_15], %18 {strides = array<i32>} : memref<1x8x64xf32, #tpu.memory_space<vmem>>, vector<1x8x8xf32>,
    %c0_16 = arith.constant 0 : index
    %c0_17 = arith.constant 0 : index
    %c1 = arith.constant 1 : index
    %c0_18 = arith.constant 0 : index
    %19 = vector.load %arg2[%c0_16, %c0_17, %c1, %c0_18] : memref<1x4x8x32xf32, #tpu.memory_space<vmem>>, vector<1x4x1x32xf32>
    %20 = vector.shape_cast %19 : vector<1x4x1x32xf32> to vector<4x32xf32>
    %21 = arith.mulf %20, %2 : vector<4x32xf32>
    %22 = arith.addf %21, %5 : vector<4x32xf32>
    %cst_19 = arith.constant 0.000000e+00 : f32
    %23 = vector.broadcast %cst_19 : f32 to vector<4x32xf32>
    %24 = arith.maximumf %22, %23 : vector<4x32xf32>
    %cst_20 = arith.constant dense<0.000000e+00> : vector<4x8xf32>
    %25 = tpu.matmul %24, %7, %cst_20 {dimension_numbers = #tpu.dot_dimension_numbers<[1], [0], [0], [1], [0, 0, 1, 1], [], []>} : vector<4x32xf32>, vector<32x8xf32>, vector<4x8xf32> -> vector<4x8xf32>
    %cst_21 = arith.constant dense<0.000000e+00> : vector<8x8xf32>
    %26 = tpu.matmul %6, %25, %cst_21 {dimension_numbers = #tpu.dot_dimension_numbers<[1], [0], [0], [1], [0, 0, 1, 1], [], []>} : vector<8x4xf32>, vector<4x8xf32>, vector<8x8xf32> -> vector<8x8xf32>
    %c0_22 = arith.constant 0 : index
    %c0_23 = arith.constant 0 : index
    %c8 = arith.constant 8 : index
    %27 = vector.load %arg7[%c0_22, %c0_23, %c8] : memref<1x8x64xf32, #tpu.memory_space<vmem>>, vector<1x8x8xf32>
    %28 = vector.shape_cast %27 : vector<1x8x8xf32> to vector<8x8xf32>
    %29 = vector.shape_cast %26 : vector<8x8xf32> to vector<1x8x8xf32>
    tpu.vector_store %arg7[%c0_22, %c0_23, %c8], %29 {strides = array<i32>} : memref<1x8x64xf32, #tpu.memory_space<vmem>>, vector<1x8x8xf32>,
    %c0_24 = arith.constant 0 : index
    %c0_25 = arith.constant 0 : index
    %c2 = arith.constant 2 : index
    %c0_26 = arith.constant 0 : index
    %30 = vector.load %arg2[%c0_24, %c0_25, %c2, %c0_26] : memref<1x4x8x32xf32, #tpu.memory_space<vmem>>, vector<1x4x1x32xf32>
    %31 = vector.shape_cast %30 : vector<1x4x1x32xf32> to vector<4x32xf32>
    %32 = arith.mulf %31, %2 : vector<4x32xf32>
    %33 = arith.addf %32, %5 : vector<4x32xf32>
    %cst_27 = arith.constant 0.000000e+00 : f32
    %34 = vector.broadcast %cst_27 : f32 to vector<4x32xf32>
    %35 = arith.maximumf %33, %34 : vector<4x32xf32>
    %cst_28 = arith.constant dense<0.000000e+00> : vector<4x8xf32>
    %36 = tpu.matmul %35, %7, %cst_28 {dimension_numbers = #tpu.dot_dimension_numbers<[1], [0], [0], [1], [0, 0, 1, 1], [], []>} : vector<4x32xf32>, vector<32x8xf32>, vector<4x8xf32> -> vector<4x8xf32>
    %cst_29 = arith.constant dense<0.000000e+00> : vector<8x8xf32>
    %37 = tpu.matmul %6, %36, %cst_29 {dimension_numbers = #tpu.dot_dimension_numbers<[1], [0], [0], [1], [0, 0, 1, 1], [], []>} : vector<8x4xf32>, vector<4x8xf32>, vector<8x8xf32> -> vector<8x8xf32>
    %c0_30 = arith.constant 0 : index
    %c0_31 = arith.constant 0 : index
    %c16 = arith.constant 16 : index
    %38 = vector.load %arg7[%c0_30, %c0_31, %c16] : memref<1x8x64xf32, #tpu.memory_space<vmem>>, vector<1x8x8xf32>
    %39 = vector.shape_cast %38 : vector<1x8x8xf32> to vector<8x8xf32>
    %40 = vector.shape_cast %37 : vector<8x8xf32> to vector<1x8x8xf32>
    tpu.vector_store %arg7[%c0_30, %c0_31, %c16], %40 {strides = array<i32>} : memref<1x8x64xf32, #tpu.memory_space<vmem>>, vector<1x8x8xf32>,
    %c0_32 = arith.constant 0 : index
    %c0_33 = arith.constant 0 : index
    %c3 = arith.constant 3 : index
    %c0_34 = arith.constant 0 : index
    %41 = vector.load %arg2[%c0_32, %c0_33, %c3, %c0_34] : memref<1x4x8x32xf32, #tpu.memory_space<vmem>>, vector<1x4x1x32xf32>
    %42 = vector.shape_cast %41 : vector<1x4x1x32xf32> to vector<4x32xf32>
    %43 = arith.mulf %42, %2 : vector<4x32xf32>
    %44 = arith.addf %43, %5 : vector<4x32xf32>
    %cst_35 = arith.constant 0.000000e+00 : f32
    %45 = vector.broadcast %cst_35 : f32 to vector<4x32xf32>
    %46 = arith.maximumf %44, %45 : vector<4x32xf32>
    %cst_36 = arith.constant dense<0.000000e+00> : vector<4x8xf32>
    %47 = tpu.matmul %46, %7, %cst_36 {dimension_numbers = #tpu.dot_dimension_numbers<[1], [0], [0], [1], [0, 0, 1, 1], [], []>} : vector<4x32xf32>, vector<32x8xf32>, vector<4x8xf32> -> vector<4x8xf32>
    %cst_37 = arith.constant dense<0.000000e+00> : vector<8x8xf32>
    %48 = tpu.matmul %6, %47, %cst_37 {dimension_numbers = #tpu.dot_dimension_numbers<[1], [0], [0], [1], [0, 0, 1, 1], [], []>} : vector<8x4xf32>, vector<4x8xf32>, vector<8x8xf32> -> vector<8x8xf32>
    %c0_38 = arith.constant 0 : index
    %c0_39 = arith.constant 0 : index
    %c24 = arith.constant 24 : index
    %49 = vector.load %arg7[%c0_38, %c0_39, %c24] : memref<1x8x64xf32, #tpu.memory_space<vmem>>, vector<1x8x8xf32>
    %50 = vector.shape_cast %49 : vector<1x8x8xf32> to vector<8x8xf32>
    %51 = vector.shape_cast %48 : vector<8x8xf32> to vector<1x8x8xf32>
    tpu.vector_store %arg7[%c0_38, %c0_39, %c24], %51 {strides = array<i32>} : memref<1x8x64xf32, #tpu.memory_space<vmem>>, vector<1x8x8xf32>,
    %c0_40 = arith.constant 0 : index
    %c0_41 = arith.constant 0 : index
    %c4 = arith.constant 4 : index
    %c0_42 = arith.constant 0 : index
    %52 = vector.load %arg2[%c0_40, %c0_41, %c4, %c0_42] : memref<1x4x8x32xf32, #tpu.memory_space<vmem>>, vector<1x4x1x32xf32>
    %53 = vector.shape_cast %52 : vector<1x4x1x32xf32> to vector<4x32xf32>
    %54 = arith.mulf %53, %2 : vector<4x32xf32>
    %55 = arith.addf %54, %5 : vector<4x32xf32>
    %cst_43 = arith.constant 0.000000e+00 : f32
    %56 = vector.broadcast %cst_43 : f32 to vector<4x32xf32>
    %57 = arith.maximumf %55, %56 : vector<4x32xf32>
    %cst_44 = arith.constant dense<0.000000e+00> : vector<4x8xf32>
    %58 = tpu.matmul %57, %7, %cst_44 {dimension_numbers = #tpu.dot_dimension_numbers<[1], [0], [0], [1], [0, 0, 1, 1], [], []>} : vector<4x32xf32>, vector<32x8xf32>, vector<4x8xf32> -> vector<4x8xf32>
    %cst_45 = arith.constant dense<0.000000e+00> : vector<8x8xf32>
    %59 = tpu.matmul %6, %58, %cst_45 {dimension_numbers = #tpu.dot_dimension_numbers<[1], [0], [0], [1], [0, 0, 1, 1], [], []>} : vector<8x4xf32>, vector<4x8xf32>, vector<8x8xf32> -> vector<8x8xf32>
    %c0_46 = arith.constant 0 : index
    %c0_47 = arith.constant 0 : index
    %c32 = arith.constant 32 : index
    %60 = vector.load %arg7[%c0_46, %c0_47, %c32] : memref<1x8x64xf32, #tpu.memory_space<vmem>>, vector<1x8x8xf32>
    %61 = vector.shape_cast %60 : vector<1x8x8xf32> to vector<8x8xf32>
    %62 = vector.shape_cast %59 : vector<8x8xf32> to vector<1x8x8xf32>
    tpu.vector_store %arg7[%c0_46, %c0_47, %c32], %62 {strides = array<i32>} : memref<1x8x64xf32, #tpu.memory_space<vmem>>, vector<1x8x8xf32>,
    %c0_48 = arith.constant 0 : index
    %c0_49 = arith.constant 0 : index
    %c5 = arith.constant 5 : index
    %c0_50 = arith.constant 0 : index
    %63 = vector.load %arg2[%c0_48, %c0_49, %c5, %c0_50] : memref<1x4x8x32xf32, #tpu.memory_space<vmem>>, vector<1x4x1x32xf32>
    %64 = vector.shape_cast %63 : vector<1x4x1x32xf32> to vector<4x32xf32>
    %65 = arith.mulf %64, %2 : vector<4x32xf32>
    %66 = arith.addf %65, %5 : vector<4x32xf32>
    %cst_51 = arith.constant 0.000000e+00 : f32
    %67 = vector.broadcast %cst_51 : f32 to vector<4x32xf32>
    %68 = arith.maximumf %66, %67 : vector<4x32xf32>
    %cst_52 = arith.constant dense<0.000000e+00> : vector<4x8xf32>
    %69 = tpu.matmul %68, %7, %cst_52 {dimension_numbers = #tpu.dot_dimension_numbers<[1], [0], [0], [1], [0, 0, 1, 1], [], []>} : vector<4x32xf32>, vector<32x8xf32>, vector<4x8xf32> -> vector<4x8xf32>
    %cst_53 = arith.constant dense<0.000000e+00> : vector<8x8xf32>
    %70 = tpu.matmul %6, %69, %cst_53 {dimension_numbers = #tpu.dot_dimension_numbers<[1], [0], [0], [1], [0, 0, 1, 1], [], []>} : vector<8x4xf32>, vector<4x8xf32>, vector<8x8xf32> -> vector<8x8xf32>
    %c0_54 = arith.constant 0 : index
    %c0_55 = arith.constant 0 : index
    %c40 = arith.constant 40 : index
    %71 = vector.load %arg7[%c0_54, %c0_55, %c40] : memref<1x8x64xf32, #tpu.memory_space<vmem>>, vector<1x8x8xf32>
    %72 = vector.shape_cast %71 : vector<1x8x8xf32> to vector<8x8xf32>
    %73 = vector.shape_cast %70 : vector<8x8xf32> to vector<1x8x8xf32>
    tpu.vector_store %arg7[%c0_54, %c0_55, %c40], %73 {strides = array<i32>} : memref<1x8x64xf32, #tpu.memory_space<vmem>>, vector<1x8x8xf32>,
    %c0_56 = arith.constant 0 : index
    %c0_57 = arith.constant 0 : index
    %c6 = arith.constant 6 : index
    %c0_58 = arith.constant 0 : index
    %74 = vector.load %arg2[%c0_56, %c0_57, %c6, %c0_58] : memref<1x4x8x32xf32, #tpu.memory_space<vmem>>, vector<1x4x1x32xf32>
    %75 = vector.shape_cast %74 : vector<1x4x1x32xf32> to vector<4x32xf32>
    %76 = arith.mulf %75, %2 : vector<4x32xf32>
    %77 = arith.addf %76, %5 : vector<4x32xf32>
    %cst_59 = arith.constant 0.000000e+00 : f32
    %78 = vector.broadcast %cst_59 : f32 to vector<4x32xf32>
    %79 = arith.maximumf %77, %78 : vector<4x32xf32>
    %cst_60 = arith.constant dense<0.000000e+00> : vector<4x8xf32>
    %80 = tpu.matmul %79, %7, %cst_60 {dimension_numbers = #tpu.dot_dimension_numbers<[1], [0], [0], [1], [0, 0, 1, 1], [], []>} : vector<4x32xf32>, vector<32x8xf32>, vector<4x8xf32> -> vector<4x8xf32>
    %cst_61 = arith.constant dense<0.000000e+00> : vector<8x8xf32>
    %81 = tpu.matmul %6, %80, %cst_61 {dimension_numbers = #tpu.dot_dimension_numbers<[1], [0], [0], [1], [0, 0, 1, 1], [], []>} : vector<8x4xf32>, vector<4x8xf32>, vector<8x8xf32> -> vector<8x8xf32>
    %c0_62 = arith.constant 0 : index
    %c0_63 = arith.constant 0 : index
    %c48 = arith.constant 48 : index
    %82 = vector.load %arg7[%c0_62, %c0_63, %c48] : memref<1x8x64xf32, #tpu.memory_space<vmem>>, vector<1x8x8xf32>
    %83 = vector.shape_cast %82 : vector<1x8x8xf32> to vector<8x8xf32>
    %84 = vector.shape_cast %81 : vector<8x8xf32> to vector<1x8x8xf32>
    tpu.vector_store %arg7[%c0_62, %c0_63, %c48], %84 {strides = array<i32>} : memref<1x8x64xf32, #tpu.memory_space<vmem>>, vector<1x8x8xf32>,
    %c0_64 = arith.constant 0 : index
    %c0_65 = arith.constant 0 : index
    %c7 = arith.constant 7 : index
    %c0_66 = arith.constant 0 : index
    %85 = vector.load %arg2[%c0_64, %c0_65, %c7, %c0_66] : memref<1x4x8x32xf32, #tpu.memory_space<vmem>>, vector<1x4x1x32xf32>
    %86 = vector.shape_cast %85 : vector<1x4x1x32xf32> to vector<4x32xf32>
    %87 = arith.mulf %86, %2 : vector<4x32xf32>
    %88 = arith.addf %87, %5 : vector<4x32xf32>
    %cst_67 = arith.constant 0.000000e+00 : f32
    %89 = vector.broadcast %cst_67 : f32 to vector<4x32xf32>
    %90 = arith.maximumf %88, %89 : vector<4x32xf32>
    %cst_68 = arith.constant dense<0.000000e+00> : vector<4x8xf32>
    %91 = tpu.matmul %90, %7, %cst_68 {dimension_numbers = #tpu.dot_dimension_numbers<[1], [0], [0], [1], [0, 0, 1, 1], [], []>} : vector<4x32xf32>, vector<32x8xf32>, vector<4x8xf32> -> vector<4x8xf32>
    %cst_69 = arith.constant dense<0.000000e+00> : vector<8x8xf32>
    %92 = tpu.matmul %6, %91, %cst_69 {dimension_numbers = #tpu.dot_dimension_numbers<[1], [0], [0], [1], [0, 0, 1, 1], [], []>} : vector<8x4xf32>, vector<4x8xf32>, vector<8x8xf32> -> vector<8x8xf32>
    %c0_70 = arith.constant 0 : index
    %c0_71 = arith.constant 0 : index
    %c56 = arith.constant 56 : index
    %93 = vector.load %arg7[%c0_70, %c0_71, %c56] : memref<1x8x64xf32, #tpu.memory_space<vmem>>, vector<1x8x8xf32>
    %94 = vector.shape_cast %93 : vector<1x8x8xf32> to vector<8x8xf32>
    %95 = vector.shape_cast %92 : vector<8x8xf32> to vector<1x8x8xf32>
    tpu.vector_store %arg7[%c0_70, %c0_71, %c56], %95 {strides = array<i32>} : memref<1x8x64xf32, #tpu.memory_space<vmem>>, vector<1x8x8xf32>,
    return
  }
  func.func @transform_0(%arg0: i32, %arg1: i32) -> (i32, i32, i32, i32) {
    %c0_i32 = arith.constant 0 : i32
    %c0_i32_0 = arith.constant 0 : i32
    %c0_i32_1 = arith.constant 0 : i32
    return %arg0, %c0_i32, %arg1, %c0_i32_0 : i32, i32, i32, i32
  }
  func.func @transform_1(%arg0: i32, %arg1: i32) -> (i32, i32) {
    %c0_i32 = arith.constant 0 : i32
    %c0_i32_0 = arith.constant 0 : i32
    %c0_i32_1 = arith.constant 0 : i32
    return %c0_i32, %c0_i32_0 : i32, i32
  }
  func.func @transform_2(%arg0: i32, %arg1: i32) -> (i32, i32) {
    %c0_i32 = arith.constant 0 : i32
    %c0_i32_0 = arith.constant 0 : i32
    %c0_i32_1 = arith.constant 0 : i32
    return %c0_i32, %c0_i32_0 : i32, i32
  }
  func.func @transform_3(%arg0: i32, %arg1: i32) -> (i32, i32) {
    %c0_i32 = arith.constant 0 : i32
    %c0_i32_0 = arith.constant 0 : i32
    %c0_i32_1 = arith.constant 0 : i32
    return %c0_i32, %c0_i32_0 : i32, i32
  }
  func.func @transform_4(%arg0: i32, %arg1: i32) -> (i32, i32) {
    %c0_i32 = arith.constant 0 : i32
    %c0_i32_0 = arith.constant 0 : i32
    %c0_i32_1 = arith.constant 0 : i32
    return %c0_i32, %c0_i32_0 : i32, i32
  }
  func.func @transform_5(%arg0: i32, %arg1: i32) -> (i32, i32, i32) {
    %c0_i32 = arith.constant 0 : i32
    %c0_i32_0 = arith.constant 0 : i32
    return %arg0, %c0_i32, %arg1 : i32, i32, i32
  }
}

</mosaic_0001>

<bundles_post_ra>
// kernel: transition_forward.1
= control target key start
LH: loop header
LB: loop body
LE: loop exit
PB: predicated region body
PF: predicated region fallthrough
CT: control target
= control target key end

     0   :  { %s2149_s18 = smov 0   ;;  %s2151_s19 = smov 0   ;;  %s2502_s0 = inlined_call_operand.vmem [shape: f32[2,4,8,32], index: 0, kind: input, shape index: {}]   ;;  %s2503_s1 = inlined_call_operand.vmem [shape: f32[4,1], index: 1, kind: input, shape index: {}]   ;;  %s2504_s2 = inlined_call_operand.vmem [shape: f32[4,1], index: 2, kind: input, shape index: {}]   ;;  %s2505_s3 = inlined_call_operand.vmem [shape: f32[8,4], index: 3, kind: input, shape index: {}]   ;;  %s2506_s4 = inlined_call_operand.vmem [shape: f32[32,8], index: 4, kind: input, shape index: {}]   ;;  %s2507_s5 = inlined_call_operand.vmem [shape: f32[2,8,64], index: 5, kind: output, shape index: {}]  }
   0x1   :  { %s2153_s20 = smov 0  }
   0x2 LB: > { %s27_s21 = sadd.s32 1, %s2102_s19  ;;  %p1785_p0 = scmp.ge.s32.totalorder %s2106_s20, 1  ;;  %s2106_s20 = sphi %s2153_s20, %s15_s20   ;;  %s2102_s19 = sphi %s2151_s19, %s2509_s19   ;;  %s2098_s18 = sphi %s2149_s18, %s2508_s18  }
   0x3   : > { %p29_p1 = scmp.ge.s32.totalorder %s27_s21, 2  ;;  %p206_p2 = scmp.lt.s32.totalorder %s2106_s20, 3 }
   0x5   : > { %s2511_s21 = smov (%p29_p1, %s27_s21), 0  ;;  %p207_p3 = pnand %p1785_p0, %p206_p2 }
   0x6   : > { %v254_v0 = vld [vmem:[%s2503_s1] sm:$0xf] (!%p207_p3)  ;;  %v2108_v1 = vmov (!%p207_p3), 0   ;;  %v266_v4 = vld [vmem:[%s2506_s4 + $0x8] sm:$0xff] (!%p207_p3)  ;;  %v267_v5 = vld [vmem:[%s2506_s4 + $0x10] sm:$0xff] (!%p207_p3)  ;;  %v2109_v6 = vmov (!%p207_p3), 0.0|0.0  }
   0x7   : > { %210 = sbr.rel (%p207_p3) target bundleno = 2026 (0x7ea), region = 40  ;;  %2083 = vset.pattern.permute.xlu0 (!%p207_p3), %v2108_v1  ;;  %v259_v2 = vld [vmem:[%s2504_s2] sm:$0xf] (!%p207_p3)  ;;  %2000 = vmatprep.subr.bf16.mxu0 (!%p207_p3), %v2109_v6  ;;  %v268_v8 = vld [vmem:[%s2506_s4 + $0x18] sm:$0xff] (!%p207_p3)  ;;  %vm2110_vm0 = vmmov (!%p207_p3), 0   ;;  %v2111_v9 = vmov (!%p207_p3), 0.0  }
   0x8   : > { %257 = vperm.xlu0 (!%p207_p3), %2083, %v254_v0   ;;  %v265_v3 = vld [vmem:[%s2506_s4] sm:$0xff] (!%p207_p3)  ;;  %1880 = vmatprep.mubr.msk.f32.mxu0 (!%p207_p3), %vm2110_vm0, %v2111_v9  ;;  %v2196_v10 = vpack.c.bf16 (!%p207_p3), %v268_v8, %v267_v5  ;;  %p239_p4 = scmp.lt.s32.totalorder (!%p207_p3), %s2098_s18, 1  ;;  %vm304_vm1 = vcmask (!%p207_p3), 1041409   ;;  %vm307_vm2 = vcmask (!%p207_p3), 1042434   ;;  %vm310_vm3 = vcmask (!%p207_p3), 1043459   ;;  %s2113_s23 = smov (!%p207_p3), 16  }
   0x9   : > { %v2185_v7 = vpack.c.bf16 (!%p207_p3), %v266_v4, %v265_v3  ;;  %1883 = vmatprep.subr.mxu1 (!%p207_p3), %v2111_v9  ;;  %1885 = vmatprep.mubr.msk.f32.mxu1 (!%p207_p3), %vm2110_vm0, %v2111_v9  ;;  %vm312_vm4 = vcmask (!%p207_p3), 261120   ;;  %vm389_vm5 = vcmask (!%p207_p3), 1043456   ;;  %vm385_vm6 = vcmask (!%p207_p3), 31744   ;;  %s2114_s24 = smov (!%p207_p3), 24   ;;  %s2115_s25 = smov (!%p207_p3), 32  }
   0xa   : > { %vm463_vm7 = vcmask (!%p207_p3), 64512   ;;  %vm640_vm8 = vcmask (!%p207_p3), 130112   ;;  %vm817_vm9 = vcmask (!%p207_p3), 195712   ;;  %vm994_vm10 = vcmask (!%p207_p3), 261312   ;;  %s2116_s26 = smov (!%p207_p3), 40   ;;  %s2117_s27 = smov (!%p207_p3), 48  }
   0xb   : > { %2002 = vmatpush3.bf16.msra.mxu0 (!%p207_p3), %v2185_v7  ;;  %vm1171_vm11 = vcmask (!%p207_p3), 326912   ;;  %vm1348_vm12 = vcmask (!%p207_p3), 392512   ;;  %vm1525_vm13 = vcmask (!%p207_p3), 458112   ;;  %s2118_s28 = smov (!%p207_p3), 56   ;;  %vm1702_vm14 = vcmask (!%p207_p3), 523712  }
   0xc   : > { %262 = vperm.xlu0 (!%p207_p3), %2083, %v259_v2   ;;  %2003 = vmatprep.subr.bf16.mxu0 (!%p207_p3), %v2109_v6 }
   0xe   : > { %s2513_s18 = smov (!%p239_p4, %s2098_s18), 1 }
   0xf   : > { %2005 = vmatpush3.bf16.msra.mxu0 %v2196_v10  ;;  %s1815_s9 = sshll.u32 %s2513_s18, 5  ;;  %s1788_s15 = sshll.u32 %s2513_s18, 3 }
  0x10   : > { %1899 = vmatprep.subr.mxu0 %v2111_v9  ;;  %s2209_s12 = scalar_lea.vmem %s2502_s0, %s1815_s9  ;;  %s2407_s22 = scalar_lea.vmem %s2507_s5, %s1788_s15 }
  0x11   : > { %v269_v11 = vld [vmem:[%s2209_s12] sm:$0x1]  ;;  %v270_v12 = vld [vmem:[%s2209_s12 + $0x8] sm:$0x1]  ;;  %v271_v13 = vld [vmem:[%s2209_s12 + $0x10] sm:$0x1] }
  0x12   : > { %v272_v14 = vld [vmem:[%s2209_s12 + $0x18] sm:$0x1]  ;;  %v465_v15 = vld [vmem:[%s2209_s12 + $0x1] sm:$0x1]  ;;  %v466_v16 = vld [vmem:[%s2209_s12 + $0x9] sm:$0x1] }
  0x13   : > { %v642_v17 = vld [vmem:[%s2209_s12 + $0x2] sm:$0x1]  ;;  %v819_v18 = vld [vmem:[%s2209_s12 + $0x3] sm:$0x1]  ;;  %v996_v19 = vld [vmem:[%s2209_s12 + $0x4] sm:$0x1] }
  0x14   : > { %v467_v21 = vld [vmem:[%s2209_s12 + $0x11] sm:$0x1]  ;;  %v468_v22 = vld [vmem:[%s2209_s12 + $0x19] sm:$0x1]  ;;  %v643_v23 = vld [vmem:[%s2209_s12 + $0xa] sm:$0x1] }
  0x15   : > { %v644_v28 = vld [vmem:[%s2209_s12 + $0x12] sm:$0x1]  ;;  %v645_v37 = vld [vmem:[%s2209_s12 + $0x1a] sm:$0x1]  ;;  %v820_v38 = vld [vmem:[%s2209_s12 + $0xb] sm:$0x1] }
  0x16   : > { %v821_v4 = vld [vmem:[%s2209_s12 + $0x13] sm:$0x1]  ;;  %s2112_s18 = smov 8  }
  0x87   : > { %v2220_v20 = vpop.permute.xlu0 %257 }
  0x88   : > { %v2226_v24 = vrot.slane %v2220_v20, 1  ;;  %v2229_v25 = vrot.slane %v2220_v20, 2  ;;  %v2232_v26 = vrot.slane %v2220_v20, 3  ;;  %v280_v27 = vmul.f32 %v269_v11, %v2220_v20 }
  0x89   : > { %v469_v29 = vmul.f32 %v465_v15, %v2220_v20  ;;  %v646_v30 = vmul.f32 %v642_v17, %v2220_v20  ;;  %v2239_v31 = vmul.f32 %v819_v18, %v2220_v20  ;;  %v2242_v32 = vmul.f32 %v996_v19, %v2220_v20 }
  0x8a   : > { %v281_v33 = vmul.f32 %v2226_v24, %v270_v12  ;;  %v282_v34 = vmul.f32 %v2229_v25, %v271_v13  ;;  %v283_v35 = vmul.f32 %v2232_v26, %v272_v14  ;;  %v470_v36 = vmul.f32 %v466_v16, %v2226_v24  ;;  %v822_v13 = vld [vmem:[%s2209_s12 + $0x1b] sm:$0x1] }
  0x8b   : > { %v2250_v39 = vpop.permute.xlu0 %262  ;;  %v471_v40 = vmul.f32 %v467_v21, %v2229_v25  ;;  %v472_v41 = vmul.f32 %v468_v22, %v2232_v26  ;;  %v647_v42 = vmul.f32 %v643_v23, %v2226_v24  ;;  %v648_v43 = vmul.f32 %v644_v28, %v2229_v25 }
  0x8c   : > { %v2257_v44 = vrot.slane %v2250_v39, 1  ;;  %v2260_v45 = vrot.slane %v2250_v39, 2  ;;  %v2263_v46 = vrot.slane %v2250_v39, 3  ;;  %v291_v47 = vadd.f32 %v280_v27, %v2250_v39 }
  0x8d   : > { %v473_v48 = vadd.f32 %v469_v29, %v2250_v39  ;;  %v649_v49 = vmul.f32 %v645_v37, %v2232_v26  ;;  %v650_v50 = vadd.f32 %v646_v30, %v2250_v39  ;;  %v824_v51 = vmul.f32 %v820_v38, %v2226_v24  ;;  %v997_v30 = vld [vmem:[%s2209_s12 + $0xc] sm:$0x1]  ;;  %v998_v37 = vld [vmem:[%s2209_s12 + $0x14] sm:$0x1] }
  0x8e   : > { %v292_v52 = vadd.f32 %v2257_v44, %v281_v33  ;;  %v293_v53 = vadd.f32 %v2260_v45, %v282_v34  ;;  %v294_v54 = vadd.f32 %v2263_v46, %v283_v35  ;;  %v295_v55 = vmax.f32 %v291_v47, 0.0 }
  0x8f   : > { %v474_v56 = vadd.f32 %v470_v36, %v2257_v44  ;;  %v475_v57 = vadd.f32 %v471_v40, %v2260_v45  ;;  %v476_v58 = vadd.f32 %v472_v41, %v2263_v46  ;;  %v477_v59 = vmax.f32 %v473_v48, 0.0 }
  0x90   : > { %v296_v60 = vmax.f32 %v292_v52, 0.0  ;;  %v297_v61 = vmax.f32 %v293_v53, 0.0  ;;  %v298_v62 = vmax.f32 %v294_v54, 0.0  ;;  %v651_v63 = vadd.f32 %v647_v42, %v2257_v44  ;;  %v1173_v54 = vld [vmem:[%s2209_s12 + $0x5] sm:$0x1] }
  0x91   : > { %v478_v0 = vmax.f32 %v474_v56, 0.0  ;;  %v479_v1 = vmax.f32 %v475_v57, 0.0  ;;  %v480_v2 = vmax.f32 %v476_v58, 0.0  ;;  %v652_v3 = vadd.f32 %v648_v43, %v2260_v45  ;;  %v999_v43 = vld [vmem:[%s2209_s12 + $0x1c] sm:$0x1] }
  0x92   : > { %v303_v5 = vrot.slane %v296_v60, 7  ;;  %v306_v8 = vrot.slane %v297_v61, 6  ;;  %v309_v11 = vrot.slane %v298_v62, 5  ;;  %v653_v12 = vadd.f32 %v649_v49, %v2263_v46 }
  0x93   : > { %v485_v14 = vrot.slane %v478_v0, 7  ;;  %v487_v15 = vrot.slane %v479_v1, 6  ;;  %v489_v16 = vrot.slane %v480_v2, 5  ;;  %v654_v17 = vmax.f32 %v650_v50, 0.0  ;;  %v1175_v0 = vld [vmem:[%s2209_s12 + $0x15] sm:$0x1] }
  0x94   : > { %v305_v18 = vsel %vm304_vm1, %v303_v5, %v295_v55  ;;  %v655_v19 = vmax.f32 %v651_v63, 0.0  ;;  %v656_v21 = vmax.f32 %v652_v3, 0.0  ;;  %v657_v22 = vmax.f32 %v653_v12, 0.0  ;;  %v1174_v63 = vld [vmem:[%s2209_s12 + $0xd] sm:$0x1] }
  0x95   : > { %v308_v23 = vsel %vm307_vm2, %v306_v8, %v305_v18  ;;  %v486_v27 = vsel %vm304_vm1, %v485_v14, %v477_v59  ;;  %v825_v28 = vmul.f32 %v821_v4, %v2229_v25  ;;  %v826_v29 = vmul.f32 %v822_v13, %v2232_v26  ;;  %v1176_v4 = vld [vmem:[%s2209_s12 + $0x1d] sm:$0x1]  ;;  %v1351_v18 = vld [vmem:[%s2209_s12 + $0xe] sm:$0x1] }
  0x96   : > { %v311_v33 = vsel %vm310_vm3, %v309_v11, %v308_v23  ;;  %v488_v34 = vsel %vm307_vm2, %v487_v15, %v486_v27  ;;  %v662_v35 = vrot.slane %v655_v19, 7  ;;  %v664_v36 = vrot.slane %v656_v21, 6 }
  0x97   : > { %1881 = vmatmul.mubr.msk.f32.vlgmr.msra.gmra.mrb[0].mxu0 %vm312_vm4, %v311_v33  ;;  %v2292_v38 = vsel %vm310_vm3, %v489_v16, %v488_v34  ;;  %v666_v40 = vrot.slane %v657_v22, 5  ;;  %v827_v41 = vadd.f32 %v2239_v31, %v2250_v39  ;;  %v828_v42 = vadd.f32 %v824_v51, %v2257_v44  ;;  %v1352_v33 = vld [vmem:[%s2209_s12 + $0x16] sm:$0x1]  ;;  %v1353_v34 = vld [vmem:[%s2209_s12 + $0x1e] sm:$0x1] }
  0x98   : > { %v663_v47 = vsel %vm304_vm1, %v662_v35, %v654_v17  ;;  %1901 = vmatprep.mubr.msk.f32.mxu0 %vm2110_vm0, %v2111_v9  ;;  %v829_v48 = vadd.f32 %v825_v28, %v2260_v45  ;;  %v830_v49 = vadd.f32 %v826_v29, %v2263_v46  ;;  %v1001_v50 = vmul.f32 %v997_v30, %v2226_v24  ;;  %v1350_v17 = vld [vmem:[%s2209_s12 + $0x6] sm:$0x1] }
  0x99   : > { %v665_v52 = vsel %vm307_vm2, %v664_v36, %v663_v47  ;;  %v831_v53 = vmax.f32 %v827_v41, 0.0  ;;  %v832_v31 = vmax.f32 %v828_v42, 0.0  ;;  %v1002_v51 = vmul.f32 %v998_v37, %v2229_v25 }
  0x9a   : > { %v2308_v55 = vsel %vm310_vm3, %v666_v40, %v665_v52  ;;  %v833_v56 = vmax.f32 %v829_v48, 0.0  ;;  %v834_v57 = vmax.f32 %v830_v49, 0.0  ;;  %v1003_v58 = vmul.f32 %v999_v43, %v2232_v26  ;;  %v1527_v48 = vld [vmem:[%s2209_s12 + $0x7] sm:$0x1] }
  0x9b   : > { %v839_v59 = vrot.slane %v832_v31, 7  ;;  %v1004_v60 = vadd.f32 %v2242_v32, %v2250_v39  ;;  %v1005_v61 = vadd.f32 %v1001_v50, %v2257_v44  ;;  %v1006_v62 = vadd.f32 %v1002_v51, %v2260_v45  ;;  %v1528_v31 = vld [vmem:[%s2209_s12 + $0xf] sm:$0x1] }
  0x9c   : > { %v841_v1 = vrot.slane %v833_v56, 6  ;;  %v843_v2 = vrot.slane %v834_v57, 5  ;;  %v1007_v3 = vadd.f32 %v1003_v58, %v2263_v46  ;;  %v1177_v5 = vmul.f32 %v1173_v54, %v2220_v20  ;;  %v1529_v58 = vld [vmem:[%s2209_s12 + $0x17] sm:$0x1] }
  0x9d   : > { %v840_v8 = vsel %vm304_vm1, %v839_v59, %v831_v53  ;;  %v1008_v11 = vmax.f32 %v1004_v60, 0.0  ;;  %v1009_v12 = vmax.f32 %v1005_v61, 0.0  ;;  %v1010_v32 = vmax.f32 %v1006_v62, 0.0  ;;  %v1530_v61 = vld [vmem:[%s2209_s12 + $0x1f] sm:$0x1] }
  0x9e   : > { %v842_v13 = vsel %vm307_vm2, %v841_v1, %v840_v8  ;;  %v1011_v14 = vmax.f32 %v1007_v3, 0.0  ;;  %v1178_v15 = vmul.f32 %v1174_v63, %v2226_v24  ;;  %v1179_v16 = vmul.f32 %v1175_v0, %v2229_v25 }
  0x9f   : > { %v2327_v19 = vsel %vm310_vm3, %v843_v2, %v842_v13  ;;  %v1016_v21 = vrot.slane %v1009_v12, 7  ;;  %v1018_v22 = vrot.slane %v1010_v32, 6  ;;  %v1180_v23 = vmul.f32 %v1176_v4, %v2232_v26 }
  0xa0   : > { %v1020_v27 = vrot.slane %v1011_v14, 5  ;;  %v1181_v28 = vadd.f32 %v1177_v5, %v2250_v39  ;;  %v1182_v29 = vadd.f32 %v1178_v15, %v2257_v44  ;;  %v1183_v30 = vadd.f32 %v1179_v16, %v2260_v45 }
  0xa1   : > { %v1017_v35 = vsel %vm304_vm1, %v1016_v21, %v1008_v11  ;;  %v1184_v36 = vadd.f32 %v1180_v23, %v2263_v46  ;;  %v1354_v37 = vmul.f32 %v1350_v17, %v2220_v20  ;;  %v1355_v40 = vmul.f32 %v1351_v18, %v2226_v24 }
  0xa2   : > { %v1019_v41 = vsel %vm307_vm2, %v1018_v22, %v1017_v35  ;;  %v1185_v42 = vmax.f32 %v1181_v28, 0.0  ;;  %v1186_v43 = vmax.f32 %v1182_v29, 0.0  ;;  %v1187_v47 = vmax.f32 %v1183_v30, 0.0 }
  0xa3   : > { %v2342_v49 = vsel %vm310_vm3, %v1020_v27, %v1019_v41  ;;  %v1188_v50 = vmax.f32 %v1184_v36, 0.0  ;;  %v1356_v52 = vmul.f32 %v1352_v33, %v2229_v25  ;;  %v1357_v53 = vmul.f32 %v1353_v34, %v2232_v26 }
  0xa4   : > { %v1193_v51 = vrot.slane %v1186_v43, 7  ;;  %v1195_v54 = vrot.slane %v1187_v47, 6  ;;  %v1358_v56 = vadd.f32 %v1354_v37, %v2250_v39  ;;  %v1359_v57 = vadd.f32 %v1355_v40, %v2257_v44 }
  0xa5   : > { %v1360_v59 = vadd.f32 %v1356_v52, %v2260_v45  ;;  %v1361_v60 = vadd.f32 %v1357_v53, %v2263_v46  ;;  %v1531_v62 = vmul.f32 %v1527_v48, %v2220_v20  ;;  %v1197_v0 = vrot.slane %v1188_v50, 5 }
  0xa6   : > { %v1194_v63 = vsel %vm304_vm1, %v1193_v51, %v1185_v42  ;;  %v1363_v1 = vmax.f32 %v1359_v57, 0.0  ;;  %v1532_v2 = vmul.f32 %v1528_v31, %v2226_v24  ;;  %v1533_v8 = vmul.f32 %v1529_v58, %v2229_v25 }
  0xa7   : > { %v1196_v3 = vsel %vm307_vm2, %v1195_v54, %v1194_v63  ;;  %v1364_v4 = vmax.f32 %v1360_v59, 0.0  ;;  %v1365_v5 = vmax.f32 %v1361_v60, 0.0  ;;  %v1362_v12 = vmax.f32 %v1358_v56, 0.0 }
  0xa8   : > { %v2359_v11 = vsel %vm310_vm3, %v1197_v0, %v1196_v3  ;;  %v1370_v32 = vrot.slane %v1363_v1, 7  ;;  %v1534_v13 = vmul.f32 %v1530_v61, %v2232_v26  ;;  %v1535_v14 = vadd.f32 %v1531_v62, %v2250_v39 }
  0xa9   : > { %v1372_v20 = vrot.slane %v1364_v4, 6  ;;  %v1536_v15 = vadd.f32 %v1532_v2, %v2257_v44  ;;  %v1537_v24 = vadd.f32 %v1533_v8, %v2260_v45  ;;  %v1374_v17 = vrot.slane %v1365_v5, 5 }
  0xaa   : > { %v1371_v16 = vsel %vm304_vm1, %v1370_v32, %v1362_v12  ;;  %v1538_v18 = vadd.f32 %v1534_v13, %v2263_v46  ;;  %v1539_v27 = vmax.f32 %v1535_v14, 0.0  ;;  %v2379_v46 = vld [vmem:[%s2505_s3] sm:$0xff] }
  0xab   : > { %v1373_v25 = vsel %vm307_vm2, %v1372_v20, %v1371_v16  ;;  %v1540_v21 = vmax.f32 %v1536_v15, 0.0  ;;  %v1541_v22 = vmax.f32 %v1537_v24, 0.0 }
  0xac   : > { %v2369_v23 = vsel %vm310_vm3, %v1374_v17, %v1373_v25  ;;  %v1542_v26 = vmax.f32 %v1538_v18, 0.0 }
  0xad   : > { %v1547_v28 = vrot.slane %v1540_v21, 7  ;;  %v1549_v39 = vrot.slane %v1541_v22, 6 }
  0xae   : > { %v1551_v29 = vrot.slane %v1542_v26, 5 }
  0xaf   : > { %v1548_v44 = vsel %vm304_vm1, %v1547_v28, %v1539_v27 }
  0xb0   : > { %v1550_v45 = vsel %vm307_vm2, %v1549_v39, %v1548_v44 }
  0xb1   : > { %v2374_v30 = vsel %vm310_vm3, %v1551_v29, %v1550_v45 }
 0x16a   : > { %v381_v33 = vpop.f32.mrb[0].mxu0 }
 0x16b   : > { %v1882_v34 = vpop.f32.mrb[1].mxu0  ;;  %1884 = vmatpush3.msk.msra.mxu1 %vm389_vm5, %v381_v33 }
 0x16c   : > { %1886 = vmatmul.mubr.msk.f32.vlgmr.msra.gmra.mrb[0].mxu1 %vm385_vm6, %v2379_v46  ;;  %2006 = vmatprep.subr.bf16.mxu1 %v2109_v6 }
 0x16d   : > { %2008 = vmatpush3.bf16.msra.mxu1 %v2185_v7  ;;  %1896 = vmatprep.mubr.msk.f32.mxu1 %vm2110_vm0, %v2111_v9 }
 0x16e   : > { %2009 = vmatprep.subr.bf16.mxu1 %v2109_v6 }
 0x171   : > { %2011 = vmatpush3.bf16.msra.mxu1 %v2196_v10 }
 0x172   : > { %2012 = vmatprep.subr.bf16.mxu1 %v2109_v6 }
 0x174   : > { %1897 = vmatmul.mubr.msk.f32.vlgmr.msra.gmra.mrb[2].mxu1 %vm312_vm4, %v2292_v38 }
 0x175   : > { %2014 = vmatpush3.bf16.msra.mxu1 %v2185_v7  ;;  %1912 = vmatprep.mubr.msk.f32.mxu1 %vm2110_vm0, %v2111_v9 }
 0x176   : > { %2015 = vmatprep.subr.bf16.mxu1 %v2109_v6 }
 0x179   : > { %2017 = vmatpush3.bf16.msra.mxu1 %v2196_v10 }
 0x17a   : > { %1931 = vmatprep.subr.mxu1 %v2111_v9 }
 0x17c   : > { %1913 = vmatmul.mubr.msk.f32.vlgmr.msra.gmra.mrb[4].mxu1 %vm312_vm4, %v2308_v55 }
 0x17d   : > { %1933 = vmatprep.mubr.msk.f32.mxu1 %vm2110_vm0, %v2111_v9 }
 0x23f   : > { %v459_v38 = vpop.f32.mrb[0].mxu1 }
 0x240   : > { %464 = vst.msk [vmem:[%s2407_s22] sm:$0xff] %vm463_vm7, %v459_v38  ;;  %v1887_v35 = vpop.f32.mrb[1].mxu1 }
 0x247   : > { %v559_v36 = vpop.f32.mrb[2].mxu1 }
 0x248   : > { %v1898_v37 = vpop.f32.mrb[3].mxu1  ;;  %1900 = vmatpush3.msk.msra.mxu0 %vm389_vm5, %v559_v36 }
 0x249   : > { %1902 = vmatmul.mubr.msk.f32.vlgmr.msra.gmra.mrb[2].mxu0 %vm385_vm6, %v2379_v46  ;;  %1915 = vmatprep.subr.mxu0 %v2111_v9 }
 0x24a   : > { %1917 = vmatprep.mubr.msk.f32.mxu0 %vm2110_vm0, %v2111_v9 }
 0x24f   : > { %v736_v55 = vpop.f32.mrb[4].mxu1 }
 0x250   : > { %v1914_v40 = vpop.f32.mrb[5].mxu1  ;;  %1916 = vmatpush3.msk.msra.mxu0 %vm389_vm5, %v736_v55 }
 0x251   : > { %1918 = vmatmul.mubr.msk.f32.vlgmr.msra.gmra.mrb[4].mxu0 %vm385_vm6, %v2379_v46  ;;  %2018 = vmatprep.subr.bf16.mxu0 %v2109_v6 }
 0x252   : > { %2020 = vmatpush3.bf16.msra.mxu0 %v2185_v7  ;;  %1928 = vmatprep.mubr.msk.f32.mxu0 %vm2110_vm0, %v2111_v9 }
 0x253   : > { %2021 = vmatprep.subr.bf16.mxu0 %v2109_v6 }
 0x256   : > { %2023 = vmatpush3.bf16.msra.mxu0 %v2196_v10 }
 0x257   : > { %1947 = vmatprep.subr.mxu0 %v2111_v9 }
 0x259   : > { %1929 = vmatmul.mubr.msk.f32.vlgmr.msra.gmra.mrb[6].mxu0 %vm312_vm4, %v2327_v19 }
 0x25a   : > { %1949 = vmatprep.mubr.msk.f32.mxu0 %vm2110_vm0, %v2111_v9 }
 0x31c   : > { %v632_v41 = vpop.f32.mrb[2].mxu0 }
 0x31d   : > { %v1903_v42 = vpop.f32.mrb[3].mxu0  ;;  %637 = vrot.lane.b32.xlu1 %v632_v41, %s2112_s18 }
 0x324   : > { %v809_v43 = vpop.f32.mrb[4].mxu0 }
 0x325   : > { %v1919_v47 = vpop.f32.mrb[5].mxu0  ;;  %814 = vrot.lane.b32.xlu1 %v809_v43, %s2113_s23 }
 0x32c   : > { %v913_v48 = vpop.f32.mrb[6].mxu0 }
 0x32d   : > { %v1930_v50 = vpop.f32.mrb[7].mxu0  ;;  %1932 = vmatpush3.msk.msra.mxu1 %vm389_vm5, %v913_v48 }
 0x32e   : > { %1934 = vmatmul.mubr.msk.f32.vlgmr.msra.gmra.mrb[6].mxu1 %vm385_vm6, %v2379_v46  ;;  %2024 = vmatprep.subr.bf16.mxu1 %v2109_v6 }
 0x32f   : > { %2026 = vmatpush3.bf16.msra.mxu1 %v2185_v7  ;;  %1944 = vmatprep.mubr.msk.f32.mxu1 %vm2110_vm0, %v2111_v9 }
 0x330   : > { %2027 = vmatprep.subr.bf16.mxu1 %v2109_v6 }
 0x333   : > { %2029 = vmatpush3.bf16.msra.mxu1 %v2196_v10 }
 0x334   : > { %1963 = vmatprep.subr.mxu1 %v2111_v9 }
 0x336   : > { %1945 = vmatmul.mubr.msk.f32.vlgmr.msra.gmra.mrb[8].mxu1 %vm312_vm4, %v2342_v49 }
 0x337   : > { %1965 = vmatprep.mubr.msk.f32.mxu1 %vm2110_vm0, %v2111_v9 }
 0x38f   : > { %v638_v19 = vpop.permute.xlu1 %637 }
 0x390   : > { %641 = vst.msk [vmem:[%s2407_s22] sm:$0xff] %vm640_vm8, %v638_v19 }
 0x397   : > { %v815_v52 = vpop.permute.xlu1 %814 }
 0x398   : > { %818 = vst.msk [vmem:[%s2407_s22] sm:$0xff] %vm817_vm9, %v815_v52 }
 0x401   : > { %v986_v53 = vpop.f32.mrb[6].mxu1 }
 0x402   : > { %v1935_v31 = vpop.f32.mrb[7].mxu1  ;;  %991 = vrot.lane.b32.xlu0 %v986_v53, %s2114_s24 }
 0x409   : > { %v1090_v51 = vpop.f32.mrb[8].mxu1 }
 0x40a   : > { %v1946_v54 = vpop.f32.mrb[9].mxu1  ;;  %1948 = vmatpush3.msk.msra.mxu0 %vm389_vm5, %v1090_v51 }
 0x40b   : > { %1950 = vmatmul.mubr.msk.f32.vlgmr.msra.gmra.mrb[8].mxu0 %vm385_vm6, %v2379_v46  ;;  %2030 = vmatprep.subr.bf16.mxu0 %v2109_v6 }
 0x40c   : > { %2032 = vmatpush3.bf16.msra.mxu0 %v2185_v7  ;;  %1960 = vmatprep.mubr.msk.f32.mxu0 %vm2110_vm0, %v2111_v9 }
 0x40d   : > { %2033 = vmatprep.subr.bf16.mxu0 %v2109_v6 }
 0x410   : > { %2035 = vmatpush3.bf16.msra.mxu0 %v2196_v10 }
 0x411   : > { %1979 = vmatprep.subr.mxu0 %v2111_v9 }
 0x413   : > { %1961 = vmatmul.mubr.msk.f32.vlgmr.msra.gmra.mrb[10].mxu0 %vm312_vm4, %v2359_v11 }
 0x414   : > { %1981 = vmatprep.mubr.msk.f32.mxu0 %vm2110_vm0, %v2111_v9 }
 0x474   : > { %v992_v49 = vpop.permute.xlu0 %991 }
 0x475   : > { %995 = vst.msk [vmem:[%s2407_s22] sm:$0xff] %vm994_vm10, %v992_v49 }
 0x4de   : > { %v1163_v56 = vpop.f32.mrb[8].mxu0 }
 0x4df   : > { %v1951_v57 = vpop.f32.mrb[9].mxu0  ;;  %1168 = vrot.lane.b32.xlu1 %v1163_v56, %s2115_s25 }
 0x4e6   : > { %v1267_v58 = vpop.f32.mrb[10].mxu0 }
 0x4e7   : > { %v1962_v59 = vpop.f32.mrb[11].mxu0  ;;  %1964 = vmatpush3.msk.msra.mxu1 %vm389_vm5, %v1267_v58 }
 0x4e8   : > { %1966 = vmatmul.mubr.msk.f32.vlgmr.msra.gmra.mrb[10].mxu1 %vm385_vm6, %v2379_v46  ;;  %2036 = vmatprep.subr.bf16.mxu1 %v2109_v6 }
 0x4e9   : > { %2038 = vmatpush3.bf16.msra.mxu1 %v2185_v7  ;;  %1976 = vmatprep.mubr.msk.f32.mxu1 %vm2110_vm0, %v2111_v9 }
 0x4ea   : > { %2039 = vmatprep.subr.bf16.mxu1 %v2109_v6 }
 0x4ed   : > { %2041 = vmatpush3.bf16.msra.mxu1 %v2196_v10 }
 0x4ee   : > { %1995 = vmatprep.subr.mxu1 %v2111_v9 }
 0x4f0   : > { %1977 = vmatmul.mubr.msk.f32.vlgmr.msra.gmra.mrb[12].mxu1 %vm312_vm4, %v2369_v23 }
 0x4f1   : > { %1997 = vmatprep.mubr.msk.f32.mxu1 %vm2110_vm0, %v2111_v9 }
 0x551   : > { %v1169_v60 = vpop.permute.xlu1 %1168 }
 0x552   : > { %1172 = vst.msk [vmem:[%s2407_s22] sm:$0xff] %vm1171_vm11, %v1169_v60 }
 0x5bb   : > { %v1340_v61 = vpop.f32.mrb[10].mxu1 }
 0x5bc   : > { %v1967_v62 = vpop.f32.mrb[11].mxu1  ;;  %1345 = vrot.lane.b32.xlu0 %v1340_v61, %s2116_s26 }
 0x5c3   : > { %v1444_v63 = vpop.f32.mrb[12].mxu1 }
 0x5c4   : > { %v1978_v0 = vpop.f32.mrb[13].mxu1  ;;  %1980 = vmatpush3.msk.msra.mxu0 %vm389_vm5, %v1444_v63 }
 0x5c5   : > { %1982 = vmatmul.mubr.msk.f32.vlgmr.msra.gmra.mrb[12].mxu0 %vm385_vm6, %v2379_v46  ;;  %2042 = vmatprep.subr.bf16.mxu0 %v2109_v6 }
 0x5c6   : > { %2044 = vmatpush3.bf16.msra.mxu0 %v2185_v7  ;;  %1992 = vmatprep.mubr.msk.f32.mxu0 %vm2110_vm0, %v2111_v9 }
 0x5c7   : > { %2045 = vmatprep.subr.bf16.mxu0 %v2109_v6 }
 0x5ca   : > { %2047 = vmatpush3.bf16.msra.mxu0 %v2196_v10 }
 0x5cd   : > { %1993 = vmatmul.mubr.msk.f32.vlgmr.msra.gmra.mrb[14].mxu0 %vm312_vm4, %v2374_v30 }
 0x62e   : > { %v1346_v1 = vpop.permute.xlu0 %1345 }
 0x62f   : > { %1349 = vst.msk [vmem:[%s2407_s22] sm:$0xff] %vm1348_vm12, %v1346_v1 }
 0x698   : > { %v1517_v2 = vpop.f32.mrb[12].mxu0 }
 0x699   : > { %v1983_v3 = vpop.f32.mrb[13].mxu0  ;;  %1522 = vrot.lane.b32.xlu1 %v1517_v2, %s2117_s27 }
 0x6a0   : > { %v1621_v7 = vpop.f32.mrb[14].mxu0 }
 0x6a1   : > { %v1994_v4 = vpop.f32.mrb[15].mxu0  ;;  %1996 = vmatpush3.msk.msra.mxu1 %vm389_vm5, %v1621_v7 }
 0x6a2   : > { %1998 = vmatmul.mubr.msk.f32.vlgmr.msra.gmra.mrb[14].mxu1 %vm385_vm6, %v2379_v46 }
 0x70b   : > { %v1523_v6 = vpop.permute.xlu1 %1522 }
 0x70c   : > { %1526 = vst.msk [vmem:[%s2407_s22] sm:$0xff] %vm1525_vm13, %v1523_v6 }
 0x775   : > { %v1694_v9 = vpop.f32.mrb[14].mxu1 }
 0x776   : > { %v1999_v10 = vpop.f32.mrb[15].mxu1  ;;  %1699 = vrot.lane.b32.xlu0 %v1694_v9, %s2118_s28 }
 0x7e8   : > { %v1700_v5 = vpop.permute.xlu0 %1699 }
 0x7e9   : > { %1703 = vst.msk [vmem:[%s2407_s22] sm:$0xff] %vm1702_vm14, %v1700_v5 }
 0x7ea PF: > { %s15_s20 = sadd.s32 1, %s2106_s20   ;;  %s2508_s18 = smov %s2102_s19 }
 0x7eb   : > { %p12_p5 = scmp.ge.s32.totalorder %s15_s20, 4   ;;  %s2509_s19 = smov %s2511_s21 }
 0x7ed   :  { %14 = sbr.rel (!%p12_p5) target bundleno = 2 (0x2), region = 70 }

</bundles_post_ra>
